<compile_context>
chip_gen: v5e
topology: v5e:2x2
jax: 0.10.0
libtpu: 0.0.40
codegen_flags: <defaults>
</compile_context>

<pallas_src>
import functools

import jax
import jax.numpy as jnp
from jax.experimental import pallas as pl
from jax.experimental.pallas import tpu as pltpu


def orpit_kernel(in_ref, tgt_ref, loss_ref, idx_ref, one_acc, rest_acc,
                 *, n_src, t_total, t_blk):
    """One grid step: (batch block b, time block t).

    in_ref  : (bblk, 2, t_blk)  block of the native (B, 2, T) input
    tgt_ref : (bblk, N, t_blk)  block of the native (B, N, T) target
    loss_ref, idx_ref : (1, bblk) output rows, written only on the last t step
    one_acc, rest_acc : (N, bblk) f32 partial-sum accumulators (VMEM scratch)
    """
    t_idx = pl.program_id(1)

    @pl.when(t_idx == 0)
    def _init():
        one_acc[...] = jnp.zeros_like(one_acc)
        rest_acc[...] = jnp.zeros_like(rest_acc)

    ragged_t = (t_total % t_blk) != 0            # static Python bool
    if ragged_t:
        lane = jax.lax.broadcasted_iota(jnp.int32, (in_ref.shape[0], t_blk), 1)
        valid = (t_idx * t_blk + lane) < t_total

    def _masked(v):
        return jnp.where(valid, v, 0.0) if ragged_t else v

    x_one = _masked(in_ref[:, 0, :].astype(jnp.float32))     # (bblk, t_blk)
    x_rest = _masked(in_ref[:, 1, :].astype(jnp.float32))    # (bblk, t_blk)

    def load_src(n):
        # Per-source VMEM load; avoids an (N, bblk, t_blk) f32 temporary.
        return _masked(tgt_ref[:, n, :].astype(jnp.float32))

    # target_rest_n = total - target_n  =>  x_rest - target_rest_n = (x_rest - total) + target_n
    total = load_src(0)
    for n in range(1, n_src):
        total = total + load_src(n)
    rest_base = x_rest - total                                # (bblk, t_blk)

    for n in range(n_src):
        t_n = load_src(n)
        d_one = x_one - t_n
        d_rest = rest_base + t_n
        # Lane reduction per row; accumulated across T blocks in VMEM scratch.
        one_acc[n, :] = one_acc[n, :] + jnp.sum(d_one * d_one, axis=-1)
        rest_acc[n, :] = rest_acc[n, :] + jnp.sum(d_rest * d_rest, axis=-1)

    @pl.when(t_idx == pl.num_programs(1) - 1)
    def _finalize():
        inv_t = 1.0 / t_total
        inv_rest = 1.0 / (n_src - 1)
        possible = one_acc[...] * inv_t + rest_acc[...] * (inv_t * inv_rest)  # (N, bblk)
        min_val = jnp.min(possible, axis=0)                                   # (bblk,)
        hyp = jax.lax.broadcasted_iota(jnp.int32, possible.shape, 0)
        min_idx = jnp.min(jnp.where(possible == min_val[None, :], hyp, n_src),
                          axis=0)                                             # first argmin
        loss_ref[0, :] = min_val
        idx_ref[0, :] = min_idx


def _round_up(x, m):
    return -(-x // m) * m


def _vmem_budget():
    # Generation-aware: v5e/v6e = 128 MiB, v7x = 64 MiB. Fall back to the
    # smallest (v7x) capacity if the query is unavailable so we never over-ask.
    cap = 64 * 1024 * 1024
    try:
        cap = int(pltpu.get_tpu_info().vmem_capacity_bytes)
    except Exception:
        pass
    budget = (cap * 3) // 8                     # working-set target for block sizing
    limit = min((cap * 5) // 8, 96 * 1024 * 1024)
    return budget, max(limit, 32 * 1024 * 1024)


def _choose_blocks(B, N, T, budget_bytes):
    # Per (batch-row, time-sample) f32 element:
    #   double-buffered input/target blocks (sublane-padded to 8 in VMEM)
    #   + ~8 (bblk, tblk) f32 compiler-managed body temporaries.
    n_pad = _round_up(N, 8)
    bytes_per = (2 * (8 + n_pad) + 8) * 4
    max_elems = max(budget_bytes // bytes_per, 8 * 128)

    b_cap = _round_up(B, 8)
    if T <= max_elems // 8:
        tblk = T                                # full-T block: single time step, no T mask
    else:
        tblk = max(128, min(((max_elems // 8) // 128) * 128, (T // 128) * 128))

    bblk = max(8, min(max_elems // tblk, 1024, b_cap))
    bblk = (bblk // 8) * 8
    if bblk >= 128:
        bblk = (bblk // 128) * 128              # lane-dense, unmasked output stores

    # v7x has 2 TensorCores: keep >= 2 batch blocks for big batches so the
    # "parallel" batch axis can actually be sharded across both cores.
    if B >= 16 and bblk >= b_cap:
        bblk = max(8, ((b_cap // 2) // 8) * 8)
    return bblk, tblk


def orpit_forward(inp, target, batch_mean=True, block_b=None, block_t=None):
    """ORPIT forward with an MSE criterion.

    inp:    (B, 2, T) float32
    target: (B, N, T) float32 (dense-tensor branch: same N for every item)
    Returns (loss, indices); indices are int32 (torch returns int64).
    """
    B, two, T = inp.shape
    assert two == 2, "input must be (batch_size, 2, T)"
    Bt, N, Tt = target.shape
    assert Bt == B and Tt == T
    assert N >= 2, "ORPIT requires at least 2 sources (loss_rest / (N - 1))"

    budget, vmem_limit = _vmem_budget()
    bblk, tblk = _choose_blocks(B, N, T, budget)
    if block_b is not None:
        bblk = block_b
    if block_t is not None:
        tblk = block_t
    nblk = -(-B // bblk)
    n_t = -(-T // tblk)

    kernel = functools.partial(orpit_kernel, n_src=N, t_total=T, t_blk=tblk)

    loss_blk, idx_blk = pl.pallas_call(
        kernel,
        out_shape=(
            jax.ShapeDtypeStruct((nblk, bblk), jnp.float32),
            jax.ShapeDtypeStruct((nblk, bblk), jnp.int32),
        ),
        grid_spec=pltpu.PrefetchScalarGridSpec(
            num_scalar_prefetch=0,
            grid=(nblk, n_t),                        # reduction (T) axis last
            in_specs=[
                pl.BlockSpec((bblk, 2, tblk), lambda b, t: (b, 0, t)),
                pl.BlockSpec((bblk, N, tblk), lambda b, t: (b, 0, t)),
            ],
            out_specs=[
                pl.BlockSpec((1, bblk), lambda b, t: (b, 0)),
                pl.BlockSpec((1, bblk), lambda b, t: (b, 0)),
            ],
            scratch_shapes=[
                pltpu.VMEM((N, bblk), jnp.float32),   # loss_one partial sums
                pltpu.VMEM((N, bblk), jnp.float32),   # loss_rest partial sums
            ],
        ),
        compiler_params=pltpu.CompilerParams(
            dimension_semantics=("parallel", "arbitrary"),
            vmem_limit_bytes=vmem_limit,
        ),
    )(inp, target)

    # Ragged last batch block read out-of-bounds garbage rows: simply discard them.
    batch_loss = loss_blk.reshape(nblk * bblk)[:B]
    batch_indices = idx_blk.reshape(nblk * bblk)[:B]
    if batch_mean:
        batch_loss = jnp.mean(batch_loss, axis=0)
    return batch_loss, batch_indices


def orpit_reference(inp, target, batch_mean=True):
    """Pure-JAX reference mirroring the PyTorch loop (MSE criterion)."""
    B = inp.shape[0]
    N = target.shape[1]
    losses, indices = [], []
    for b in range(B):
        input_one, input_rest = inp[b, 0], inp[b, 1]
        per_idx = []
        for idx in range(N):
            target_one = target[b, idx]
            target_rest = jnp.sum(target[b], axis=0) - target[b, idx]
            loss_one = jnp.mean((input_one - target_one) ** 2)
            loss_rest = jnp.mean((input_rest - target_rest) ** 2)
            per_idx.append(loss_one + loss_rest / (N - 1))
        per_idx = jnp.stack(per_idx)
        losses.append(jnp.min(per_idx))
        indices.append(jnp.argmin(per_idx))
    loss = jnp.stack(losses)
    if batch_mean:
        loss = jnp.mean(loss)
    return loss, jnp.stack(indices).astype(jnp.int32)


if __name__ == "__main__":
    key = jax.random.PRNGKey(0)
    k1, k2, k3, k4 = jax.random.split(key, 4)

    # Case 1: small shapes consistent with the module; auto block sizes,
    # single T block, single batch block.
    B, N, T = 2, 4, 128
    inp = jax.random.normal(k1, (B, 2, T), dtype=jnp.float32)
    target = jax.random.normal(k2, (B, N, T), dtype=jnp.float32)

    loss, idx = orpit_forward(inp, target, batch_mean=True)
    jax.block_until_ready((loss, idx))
    ref_loss, ref_idx = orpit_reference(inp, target, batch_mean=True)
    assert jnp.allclose(loss, ref_loss, rtol=1e-5, atol=1e-5), (loss, ref_loss)
    assert jnp.array_equal(idx, ref_idx), (idx, ref_idx)

    # Case 2: exercises the multi-block batch grid, the T-tiled "arbitrary"
    # reduction axis, the ragged-T lane mask (T=384, block_t=256) and the
    # out-of-bounds last batch block (B=11, block_b=8).
    B2, N2, T2 = 11, 3, 384
    inp2 = jax.random.normal(k3, (B2, 2, T2), dtype=jnp.float32)
    target2 = jax.random.normal(k4, (B2, N2, T2), dtype=jnp.float32)

    loss2, idx2 = orpit_forward(inp2, target2, batch_mean=False,
                                block_b=8, block_t=256)
    jax.block_until_ready((loss2, idx2))
    ref_loss2, ref_idx2 = orpit_reference(inp2, target2, batch_mean=False)
    assert jnp.allclose(loss2, ref_loss2, rtol=1e-5, atol=1e-5), (loss2, ref_loss2)
    assert jnp.array_equal(idx2, ref_idx2), (idx2, ref_idx2)

    print("KERNEL_OK")
</pallas_src>

<mosaic_0001>
module attributes {stable_mosaic.version = 11 : i64} {
  func.func @orpit_kernel(%arg0: i32, %arg1: i32, %arg2: memref<8x2x128xf32, #tpu.memory_space<vmem>>, %arg3: memref<8x4x128xf32, #tpu.memory_space<vmem>>, %arg4: memref<1x8xf32, #tpu.memory_space<vmem>>, %arg5: memref<1x8xi32, #tpu.memory_space<vmem>>, %arg6: memref<4x8xf32, #tpu.memory_space<vmem>>, %arg7: memref<4x8xf32, #tpu.memory_space<vmem>>) attributes {dimension_semantics = [#tpu.dimension_semantics<parallel>, #tpu.dimension_semantics<arbitrary>], iteration_bounds = array<i64: 1, 1>, scalar_prefetch = 0 : i64, scratch_operands = 2 : i64, tpu.core_type = #tpu.core_type<tc>, window_params = [{transform_indices = @transform_0, window_bounds = array<i64: 8, 2, 128>}, {transform_indices = @transform_1, window_bounds = array<i64: 8, 4, 128>}, {transform_indices = @transform_2, window_bounds = array<i64: 1, 8>}, {transform_indices = @transform_3, window_bounds = array<i64: 1, 8>}]} {
    %c0_i32 = arith.constant 0 : i32
    %0 = arith.cmpi eq, %arg1, %c0_i32 : i32
    %1 = arith.extui %0 : i1 to i32
    %c0_i32_0 = arith.constant 0 : i32
    %2 = arith.cmpi ne, %1, %c0_i32_0 : i32
    scf.if %2 {
      %cst_68 = arith.constant 0.000000e+00 : f32
      %102 = vector.broadcast %cst_68 : f32 to vector<4x8xf32>
      %c0_69 = arith.constant 0 : index
      %c0_70 = arith.constant 0 : index
      %103 = vector.load %arg6[%c0_69, %c0_70] : memref<4x8xf32, #tpu.memory_space<vmem>>, vector<4x8xf32>
      tpu.vector_store %arg6[%c0_69, %c0_70], %102 {strides = array<i32>} : memref<4x8xf32, #tpu.memory_space<vmem>>, vector<4x8xf32>,
      %cst_71 = arith.constant 0.000000e+00 : f32
      %104 = vector.broadcast %cst_71 : f32 to vector<4x8xf32>
      %c0_72 = arith.constant 0 : index
      %c0_73 = arith.constant 0 : index
      %105 = vector.load %arg7[%c0_72, %c0_73] : memref<4x8xf32, #tpu.memory_space<vmem>>, vector<4x8xf32>
      tpu.vector_store %arg7[%c0_72, %c0_73], %104 {strides = array<i32>} : memref<4x8xf32, #tpu.memory_space<vmem>>, vector<4x8xf32>,
    } else {
    }
    %c0 = arith.constant 0 : index
    %c0_1 = arith.constant 0 : index
    %c0_2 = arith.constant 0 : index
    %3 = vector.load %arg2[%c0, %c0_1, %c0_2] : memref<8x2x128xf32, #tpu.memory_space<vmem>>, vector<8x1x128xf32>
    %4 = vector.shape_cast %3 : vector<8x1x128xf32> to vector<8x128xf32>
    %c0_3 = arith.constant 0 : index
    %c1 = arith.constant 1 : index
    %c0_4 = arith.constant 0 : index
    %5 = vector.load %arg2[%c0_3, %c1, %c0_4] : memref<8x2x128xf32, #tpu.memory_space<vmem>>, vector<8x1x128xf32>
    %6 = vector.shape_cast %5 : vector<8x1x128xf32> to vector<8x128xf32>
    %c0_5 = arith.constant 0 : index
    %c0_6 = arith.constant 0 : index
    %c0_7 = arith.constant 0 : index
    %7 = vector.load %arg3[%c0_5, %c0_6, %c0_7] : memref<8x4x128xf32, #tpu.memory_space<vmem>>, vector<8x1x128xf32>
    %8 = vector.shape_cast %7 : vector<8x1x128xf32> to vector<8x128xf32>
    %c0_8 = arith.constant 0 : index
    %c1_9 = arith.constant 1 : index
    %c0_10 = arith.constant 0 : index
    %9 = vector.load %arg3[%c0_8, %c1_9, %c0_10] : memref<8x4x128xf32, #tpu.memory_space<vmem>>, vector<8x1x128xf32>
    %10 = vector.shape_cast %9 : vector<8x1x128xf32> to vector<8x128xf32>
    %11 = arith.addf %8, %10 : vector<8x128xf32>
    %c0_11 = arith.constant 0 : index
    %c2 = arith.constant 2 : index
    %c0_12 = arith.constant 0 : index
    %12 = vector.load %arg3[%c0_11, %c2, %c0_12] : memref<8x4x128xf32, #tpu.memory_space<vmem>>, vector<8x1x128xf32>
    %13 = vector.shape_cast %12 : vector<8x1x128xf32> to vector<8x128xf32>
    %14 = arith.addf %11, %13 : vector<8x128xf32>
    %c0_13 = arith.constant 0 : index
    %c3 = arith.constant 3 : index
    %c0_14 = arith.constant 0 : index
    %15 = vector.load %arg3[%c0_13, %c3, %c0_14] : memref<8x4x128xf32, #tpu.memory_space<vmem>>, vector<8x1x128xf32>
    %16 = vector.shape_cast %15 : vector<8x1x128xf32> to vector<8x128xf32>
    %17 = arith.addf %14, %16 : vector<8x128xf32>
    %18 = arith.subf %6, %17 : vector<8x128xf32>
    %c0_15 = arith.constant 0 : index
    %c0_16 = arith.constant 0 : index
    %c0_17 = arith.constant 0 : index
    %19 = vector.load %arg3[%c0_15, %c0_16, %c0_17] : memref<8x4x128xf32, #tpu.memory_space<vmem>>, vector<8x1x128xf32>
    %20 = vector.shape_cast %19 : vector<8x1x128xf32> to vector<8x128xf32>
    %21 = arith.subf %4, %20 : vector<8x128xf32>
    %22 = arith.addf %18, %20 : vector<8x128xf32>
    %c0_18 = arith.constant 0 : index
    %c0_19 = arith.constant 0 : index
    %23 = vector.load %arg6[%c0_18, %c0_19] : memref<4x8xf32, #tpu.memory_space<vmem>>, vector<1x8xf32>
    %24 = vector.shape_cast %23 : vector<1x8xf32> to vector<8xf32>
    %25 = arith.mulf %21, %21 : vector<8x128xf32>
    %cst = arith.constant dense<0.000000e+00> : vector<8xf32>
    %26 = vector.multi_reduction <add>, %25, %cst [1] : vector<8x128xf32> to vector<8xf32>
    %27 = arith.addf %24, %26 : vector<8xf32>
    %c0_20 = arith.constant 0 : index
    %c0_21 = arith.constant 0 : index
    %28 = vector.load %arg6[%c0_20, %c0_21] : memref<4x8xf32, #tpu.memory_space<vmem>>, vector<1x8xf32>
    %29 = vector.shape_cast %28 : vector<1x8xf32> to vector<8xf32>
    %30 = vector.shape_cast %27 : vector<8xf32> to vector<1x8xf32>
    tpu.vector_store %arg6[%c0_20, %c0_21], %30 {strides = array<i32>} : memref<4x8xf32, #tpu.memory_space<vmem>>, vector<1x8xf32>,
    %c0_22 = arith.constant 0 : index
    %c0_23 = arith.constant 0 : index
    %31 = vector.load %arg7[%c0_22, %c0_23] : memref<4x8xf32, #tpu.memory_space<vmem>>, vector<1x8xf32>
    %32 = vector.shape_cast %31 : vector<1x8xf32> to vector<8xf32>
    %33 = arith.mulf %22, %22 : vector<8x128xf32>
    %cst_24 = arith.constant dense<0.000000e+00> : vector<8xf32>
    %34 = vector.multi_reduction <add>, %33, %cst_24 [1] : vector<8x128xf32> to vector<8xf32>
    %35 = arith.addf %32, %34 : vector<8xf32>
    %c0_25 = arith.constant 0 : index
    %c0_26 = arith.constant 0 : index
    %36 = vector.load %arg7[%c0_25, %c0_26] : memref<4x8xf32, #tpu.memory_space<vmem>>, vector<1x8xf32>
    %37 = vector.shape_cast %36 : vector<1x8xf32> to vector<8xf32>
    %38 = vector.shape_cast %35 : vector<8xf32> to vector<1x8xf32>
    tpu.vector_store %arg7[%c0_25, %c0_26], %38 {strides = array<i32>} : memref<4x8xf32, #tpu.memory_space<vmem>>, vector<1x8xf32>,
    %c0_27 = arith.constant 0 : index
    %c1_28 = arith.constant 1 : index
    %c0_29 = arith.constant 0 : index
    %39 = vector.load %arg3[%c0_27, %c1_28, %c0_29] : memref<8x4x128xf32, #tpu.memory_space<vmem>>, vector<8x1x128xf32>
    %40 = vector.shape_cast %39 : vector<8x1x128xf32> to vector<8x128xf32>
    %41 = arith.subf %4, %40 : vector<8x128xf32>
    %42 = arith.addf %18, %40 : vector<8x128xf32>
    %c1_30 = arith.constant 1 : index
    %c0_31 = arith.constant 0 : index
    %43 = vector.load %arg6[%c1_30, %c0_31] : memref<4x8xf32, #tpu.memory_space<vmem>>, vector<1x8xf32>
    %44 = vector.shape_cast %43 : vector<1x8xf32> to vector<8xf32>
    %45 = arith.mulf %41, %41 : vector<8x128xf32>
    %cst_32 = arith.constant dense<0.000000e+00> : vector<8xf32>
    %46 = vector.multi_reduction <add>, %45, %cst_32 [1] : vector<8x128xf32> to vector<8xf32>
    %47 = arith.addf %44, %46 : vector<8xf32>
    %c1_33 = arith.constant 1 : index
    %c0_34 = arith.constant 0 : index
    %48 = vector.load %arg6[%c1_33, %c0_34] : memref<4x8xf32, #tpu.memory_space<vmem>>, vector<1x8xf32>
    %49 = vector.shape_cast %48 : vector<1x8xf32> to vector<8xf32>
    %50 = vector.shape_cast %47 : vector<8xf32> to vector<1x8xf32>
    tpu.vector_store %arg6[%c1_33, %c0_34], %50 {strides = array<i32>} : memref<4x8xf32, #tpu.memory_space<vmem>>, vector<1x8xf32>,
    %c1_35 = arith.constant 1 : index
    %c0_36 = arith.constant 0 : index
    %51 = vector.load %arg7[%c1_35, %c0_36] : memref<4x8xf32, #tpu.memory_space<vmem>>, vector<1x8xf32>
    %52 = vector.shape_cast %51 : vector<1x8xf32> to vector<8xf32>
    %53 = arith.mulf %42, %42 : vector<8x128xf32>
    %cst_37 = arith.constant dense<0.000000e+00> : vector<8xf32>
    %54 = vector.multi_reduction <add>, %53, %cst_37 [1] : vector<8x128xf32> to vector<8xf32>
    %55 = arith.addf %52, %54 : vector<8xf32>
    %c1_38 = arith.constant 1 : index
    %c0_39 = arith.constant 0 : index
    %56 = vector.load %arg7[%c1_38, %c0_39] : memref<4x8xf32, #tpu.memory_space<vmem>>, vector<1x8xf32>
    %57 = vector.shape_cast %56 : vector<1x8xf32> to vector<8xf32>
    %58 = vector.shape_cast %55 : vector<8xf32> to vector<1x8xf32>
    tpu.vector_store %arg7[%c1_38, %c0_39], %58 {strides = array<i32>} : memref<4x8xf32, #tpu.memory_space<vmem>>, vector<1x8xf32>,
    %c0_40 = arith.constant 0 : index
    %c2_41 = arith.constant 2 : index
    %c0_42 = arith.constant 0 : index
    %59 = vector.load %arg3[%c0_40, %c2_41, %c0_42] : memref<8x4x128xf32, #tpu.memory_space<vmem>>, vector<8x1x128xf32>
    %60 = vector.shape_cast %59 : vector<8x1x128xf32> to vector<8x128xf32>
    %61 = arith.subf %4, %60 : vector<8x128xf32>
    %62 = arith.addf %18, %60 : vector<8x128xf32>
    %c2_43 = arith.constant 2 : index
    %c0_44 = arith.constant 0 : index
    %63 = vector.load %arg6[%c2_43, %c0_44] : memref<4x8xf32, #tpu.memory_space<vmem>>, vector<1x8xf32>
    %64 = vector.shape_cast %63 : vector<1x8xf32> to vector<8xf32>
    %65 = arith.mulf %61, %61 : vector<8x128xf32>
    %cst_45 = arith.constant dense<0.000000e+00> : vector<8xf32>
    %66 = vector.multi_reduction <add>, %65, %cst_45 [1] : vector<8x128xf32> to vector<8xf32>
    %67 = arith.addf %64, %66 : vector<8xf32>
    %c2_46 = arith.constant 2 : index
    %c0_47 = arith.constant 0 : index
    %68 = vector.load %arg6[%c2_46, %c0_47] : memref<4x8xf32, #tpu.memory_space<vmem>>, vector<1x8xf32>
    %69 = vector.shape_cast %68 : vector<1x8xf32> to vector<8xf32>
    %70 = vector.shape_cast %67 : vector<8xf32> to vector<1x8xf32>
    tpu.vector_store %arg6[%c2_46, %c0_47], %70 {strides = array<i32>} : memref<4x8xf32, #tpu.memory_space<vmem>>, vector<1x8xf32>,
    %c2_48 = arith.constant 2 : index
    %c0_49 = arith.constant 0 : index
    %71 = vector.load %arg7[%c2_48, %c0_49] : memref<4x8xf32, #tpu.memory_space<vmem>>, vector<1x8xf32>
    %72 = vector.shape_cast %71 : vector<1x8xf32> to vector<8xf32>
    %73 = arith.mulf %62, %62 : vector<8x128xf32>
    %cst_50 = arith.constant dense<0.000000e+00> : vector<8xf32>
    %74 = vector.multi_reduction <add>, %73, %cst_50 [1] : vector<8x128xf32> to vector<8xf32>
    %75 = arith.addf %72, %74 : vector<8xf32>
    %c2_51 = arith.constant 2 : index
    %c0_52 = arith.constant 0 : index
    %76 = vector.load %arg7[%c2_51, %c0_52] : memref<4x8xf32, #tpu.memory_space<vmem>>, vector<1x8xf32>
    %77 = vector.shape_cast %76 : vector<1x8xf32> to vector<8xf32>
    %78 = vector.shape_cast %75 : vector<8xf32> to vector<1x8xf32>
    tpu.vector_store %arg7[%c2_51, %c0_52], %78 {strides = array<i32>} : memref<4x8xf32, #tpu.memory_space<vmem>>, vector<1x8xf32>,
    %c0_53 = arith.constant 0 : index
    %c3_54 = arith.constant 3 : index
    %c0_55 = arith.constant 0 : index
    %79 = vector.load %arg3[%c0_53, %c3_54, %c0_55] : memref<8x4x128xf32, #tpu.memory_space<vmem>>, vector<8x1x128xf32>
    %80 = vector.shape_cast %79 : vector<8x1x128xf32> to vector<8x128xf32>
    %81 = arith.subf %4, %80 : vector<8x128xf32>
    %82 = arith.addf %18, %80 : vector<8x128xf32>
    %c3_56 = arith.constant 3 : index
    %c0_57 = arith.constant 0 : index
    %83 = vector.load %arg6[%c3_56, %c0_57] : memref<4x8xf32, #tpu.memory_space<vmem>>, vector<1x8xf32>
    %84 = vector.shape_cast %83 : vector<1x8xf32> to vector<8xf32>
    %85 = arith.mulf %81, %81 : vector<8x128xf32>
    %cst_58 = arith.constant dense<0.000000e+00> : vector<8xf32>
    %86 = vector.multi_reduction <add>, %85, %cst_58 [1] : vector<8x128xf32> to vector<8xf32>
    %87 = arith.addf %84, %86 : vector<8xf32>
    %c3_59 = arith.constant 3 : index
    %c0_60 = arith.constant 0 : index
    %88 = vector.load %arg6[%c3_59, %c0_60] : memref<4x8xf32, #tpu.memory_space<vmem>>, vector<1x8xf32>
    %89 = vector.shape_cast %88 : vector<1x8xf32> to vector<8xf32>
    %90 = vector.shape_cast %87 : vector<8xf32> to vector<1x8xf32>
    tpu.vector_store %arg6[%c3_59, %c0_60], %90 {strides = array<i32>} : memref<4x8xf32, #tpu.memory_space<vmem>>, vector<1x8xf32>,
    %c3_61 = arith.constant 3 : index
    %c0_62 = arith.constant 0 : index
    %91 = vector.load %arg7[%c3_61, %c0_62] : memref<4x8xf32, #tpu.memory_space<vmem>>, vector<1x8xf32>
    %92 = vector.shape_cast %91 : vector<1x8xf32> to vector<8xf32>
    %93 = arith.mulf %82, %82 : vector<8x128xf32>
    %cst_63 = arith.constant dense<0.000000e+00> : vector<8xf32>
    %94 = vector.multi_reduction <add>, %93, %cst_63 [1] : vector<8x128xf32> to vector<8xf32>
    %95 = arith.addf %92, %94 : vector<8xf32>
    %c3_64 = arith.constant 3 : index
    %c0_65 = arith.constant 0 : index
    %96 = vector.load %arg7[%c3_64, %c0_65] : memref<4x8xf32, #tpu.memory_space<vmem>>, vector<1x8xf32>
    %97 = vector.shape_cast %96 : vector<1x8xf32> to vector<8xf32>
    %98 = vector.shape_cast %95 : vector<8xf32> to vector<1x8xf32>
    tpu.vector_store %arg7[%c3_64, %c0_65], %98 {strides = array<i32>} : memref<4x8xf32, #tpu.memory_space<vmem>>, vector<1x8xf32>,
    %c0_i32_66 = arith.constant 0 : i32
    %99 = arith.cmpi eq, %arg1, %c0_i32_66 : i32
    %100 = arith.extui %99 : i1 to i32
    %c0_i32_67 = arith.constant 0 : i32
    %101 = arith.cmpi ne, %100, %c0_i32_67 : i32
    scf.if %101 {
      %c0_68 = arith.constant 0 : index
      %c0_69 = arith.constant 0 : index
      %102 = vector.load %arg6[%c0_68, %c0_69] : memref<4x8xf32, #tpu.memory_space<vmem>>, vector<4x8xf32>
      %cst_70 = arith.constant 7.812500e-03 : f32
      %103 = vector.broadcast %cst_70 : f32 to vector<4x8xf32>
      %104 = arith.mulf %102, %103 : vector<4x8xf32>
      %c0_71 = arith.constant 0 : index
      %c0_72 = arith.constant 0 : index
      %105 = vector.load %arg7[%c0_71, %c0_72] : memref<4x8xf32, #tpu.memory_space<vmem>>, vector<4x8xf32>
      %cst_73 = arith.constant 0.00260416674 : f32
      %106 = vector.broadcast %cst_73 : f32 to vector<4x8xf32>
      %107 = arith.mulf %105, %106 : vector<4x8xf32>
      %108 = arith.addf %104, %107 : vector<4x8xf32>
      %cst_74 = arith.constant dense<0x7F800000> : vector<8xf32>
      %109 = vector.multi_reduction <minimumf>, %108, %cst_74 [0] : vector<4x8xf32> to vector<8xf32>
      %110 = tpu.iota {dimensions = array<i32: 0>} : vector<4x8xi32>
      %111 = vector.shape_cast %109 : vector<8xf32> to vector<1x8xf32>
      %112 = vector.broadcast %111 : vector<1x8xf32> to vector<4x8xf32>
      %113 = arith.cmpf oeq, %108, %112 : vector<4x8xf32>
      %c4_i32 = arith.constant 4 : i32
      %114 = vector.broadcast %c4_i32 : i32 to vector<4x8xi32>
      %115 = arith.select %113, %110, %114 : vector<4x8xi1>, vector<4x8xi32>
      %cst_75 = arith.constant dense<2147483647> : vector<8xi32>
      %116 = vector.multi_reduction <minsi>, %115, %cst_75 [0] : vector<4x8xi32> to vector<8xi32>
      %c0_76 = arith.constant 0 : index
      %c0_77 = arith.constant 0 : index
      %117 = vector.load %arg4[%c0_76, %c0_77] : memref<1x8xf32, #tpu.memory_space<vmem>>, vector<1x8xf32>
      %118 = vector.shape_cast %117 : vector<1x8xf32> to vector<8xf32>
      %119 = vector.shape_cast %109 : vector<8xf32> to vector<1x8xf32>
      tpu.vector_store %arg4[%c0_76, %c0_77], %119 {strides = array<i32>} : memref<1x8xf32, #tpu.memory_space<vmem>>, vector<1x8xf32>,
      %c0_78 = arith.constant 0 : index
      %c0_79 = arith.constant 0 : index
      %120 = vector.load %arg5[%c0_78, %c0_79] : memref<1x8xi32, #tpu.memory_space<vmem>>, vector<1x8xi32>
      %121 = vector.shape_cast %120 : vector<1x8xi32> to vector<8xi32>
      %122 = vector.shape_cast %116 : vector<8xi32> to vector<1x8xi32>
      tpu.vector_store %arg5[%c0_78, %c0_79], %122 {strides = array<i32>} : memref<1x8xi32, #tpu.memory_space<vmem>>, vector<1x8xi32>,
    } else {
    }
    return
  }
  func.func @transform_0(%arg0: i32, %arg1: i32) -> (i32, i32, i32) {
    %c0_i32 = arith.constant 0 : i32
    %c0_i32_0 = arith.constant 0 : i32
    return %arg0, %c0_i32, %arg1 : i32, i32, i32
  }
  func.func @transform_1(%arg0: i32, %arg1: i32) -> (i32, i32, i32) {
    %c0_i32 = arith.constant 0 : i32
    %c0_i32_0 = arith.constant 0 : i32
    return %arg0, %c0_i32, %arg1 : i32, i32, i32
  }
  func.func @transform_2(%arg0: i32, %arg1: i32) -> (i32, i32) {
    %c0_i32 = arith.constant 0 : i32
    %c0_i32_0 = arith.constant 0 : i32
    return %arg0, %c0_i32 : i32, i32
  }
  func.func @transform_3(%arg0: i32, %arg1: i32) -> (i32, i32) {
    %c0_i32 = arith.constant 0 : i32
    %c0_i32_0 = arith.constant 0 : i32
    return %arg0, %c0_i32 : i32, i32
  }
}

</mosaic_0001>

<bundles_post_ra>
// kernel: tpu_custom_call.1
= control target key start
LH: loop header
LB: loop body
LE: loop exit
PB: predicated region body
PF: predicated region fallthrough
CT: control target
= control target key end

     0   :  { %9 = vsyncpa [#allocation5], 0  ;;  %s1062_s0 = inlined_call_operand.hbm [shape: f32[2,2,128], index: 0, kind: input, shape index: {}]   ;;  %s1063_s1 = inlined_call_operand.hbm [shape: f32[2,4,128], index: 1, kind: input, shape index: {}]   ;;  %s1064_s2 = inlined_call_operand.hbm [shape: f32[1,8], index: 2, kind: output, shape index: {0}]   ;;  %s1065_s3 = inlined_call_operand.hbm [shape: s32[1,8], index: 3, kind: output, shape index: {1}]  }
   0x1   :  { %10 = vsyncpa [#allocation8], 0 }
   0x2   :  { %11 = vsyncpa [#allocation6], 0 }
   0x3   :  { %12 = vsyncpa [#allocation11], 0 }
   0x4   :  { %16 = vsyncadd [#allocation5], 192  ;;  %s17_s14 = sshll.u32 %s1062_s0, 4  ;;  %s723_s15 = smov [#allocation4]   ;;  %s18_s14 = int_to_ptr.hbm [resolvable:$true] %s17_s14 }
   0x5   :  { %s19_s16 = sshll.u32 %s723_s15, 4  ;;  %s724_s17 = smov 32   ;;  %s20_s16 = int_to_ptr.vmem [resolvable:$true] %s19_s16 }
   0x6   :  { %s725_s18 = smov 2  }
   0x7   :  { %25 = dma.hbm_to_vmem [thread:$0]  %s18_s14, 64, %s20_s16, [#allocation5], %s724_s17, %s724_s17, %s725_s18  }
   0x8   :  { %29 = vsyncadd [#allocation8], 384  ;;  %s30_s21 = sshll.u32 %s1063_s1, 4  ;;  %s726_s22 = smov [#allocation7]   ;;  %s31_s21 = int_to_ptr.hbm [resolvable:$true] %s30_s21 }
   0x9   :  { %s32_s23 = sshll.u32 %s726_s22, 4  ;;  %s727_s24 = smov 64   ;;  %s33_s23 = int_to_ptr.vmem [resolvable:$true] %s32_s23 }
   0xa   :  { %s728_s25 = smov 4  }
   0xb   :  { %38 = dma.hbm_to_vmem [thread:$0]  %s31_s21, 128, %s33_s23, [#allocation8], %s727_s24, %s727_s24, %s728_s25  }
   0xc   :  { %715 = dma.done.wait [#allocation5], 256  }
   0xd   :  { %716 = vsyncadd [#allocation5], 4294967040 }
   0xe   :  { %717 = dma.done.wait [#allocation8], 512  }
   0xf   :  { %718 = vsyncadd [#allocation8], 4294966784  ;;  %vm168_vm0 = vcmask 1041409   ;;  %v758_v0 = vld [vmem:[#allocation4] sm:$0x1]  ;;  %vm171_vm1 = vcmask 1042434  }
  0x10   :  { %v760_v1 = vld [vmem:[#allocation4 + $0x2] sm:$0x1]  ;;  %v762_v2 = vld [vmem:[#allocation4 + $0x4] sm:$0x1]  ;;  %v764_v3 = vld [vmem:[#allocation4 + $0x6] sm:$0x1] }
  0x11   :  { %1073 = vst [vmem:[#allocation16_spill] sm:$0xff] %v760_v1  ;;  %v766_v4 = vld [vmem:[#allocation4 + $0x8] sm:$0x1]  ;;  %v768_v5 = vld [vmem:[#allocation4 + $0xa] sm:$0x1]  ;;  %vm174_vm2 = vcmask 1043459  }
  0x12   :  { %1074 = vst [vmem:[#allocation17_spill] sm:$0xff] %v762_v2  ;;  %v770_v6 = vld [vmem:[#allocation4 + $0xc] sm:$0x1]  ;;  %v772_v7 = vld [vmem:[#allocation4 + $0xe] sm:$0x1]  ;;  %vm177_vm3 = vcmask 1044484  }
  0x13   :  { %1075 = vst [vmem:[#allocation18_spill] sm:$0xff] %v764_v3  ;;  %v774_v8 = vld [vmem:[#allocation7 + $0x1] sm:$0x1]  ;;  %vm180_vm4 = vcmask 1045509   ;;  %v776_v9 = vld [vmem:[#allocation7 + $0x5] sm:$0x1] }
  0x14   :  { %1076 = vst [vmem:[#allocation19_spill] sm:$0xff] %v766_v4  ;;  %v778_v10 = vld [vmem:[#allocation7 + $0x9] sm:$0x1]  ;;  %v780_v11 = vld [vmem:[#allocation7 + $0xd] sm:$0x1]  ;;  %v246_v12 = vsub.f32 %v758_v0, %v774_v8  ;;  %vm183_vm5 = vcmask 1046534   ;;  %v247_v16 = vsub.f32 %v760_v1, %v776_v9 }
  0x15   :  { %1077 = vst [vmem:[#allocation20_spill] sm:$0xff] %v768_v5  ;;  %v784_v13 = vld [vmem:[#allocation7 + $0x11] sm:$0x1]  ;;  %v786_v14 = vld [vmem:[#allocation7 + $0x15] sm:$0x1]  ;;  %v248_v17 = vsub.f32 %v762_v2, %v778_v10  ;;  %v249_v18 = vsub.f32 %v764_v3, %v780_v11  ;;  %vm186_vm6 = vcmask 1047559  }
  0x16   :  { %1078 = vst [vmem:[#allocation21_spill] sm:$0xff] %v770_v6  ;;  %v788_v15 = vld [vmem:[#allocation7 + $0x19] sm:$0x1]  ;;  %v796_v19 = vld [vmem:[#allocation7 + $0x1d] sm:$0x1]  ;;  %v250_v20 = vsub.f32 %v766_v4, %v784_v13  ;;  %v251_v21 = vsub.f32 %v768_v5, %v786_v14  ;;  %v263_v23 = vmul.f32 %v246_v12, %v246_v12  ;;  %v264_v26 = vmul.f32 %v247_v16, %v247_v16  ;;  %s730_s0 = smov [#allocation9]  }
  0x17   :  { %1079 = vst [vmem:[#allocation22_spill] sm:$0xff] %v772_v7  ;;  %v252_v22 = vsub.f32 %v770_v6, %v788_v15  ;;  %v804_v24 = vld [vmem:[#allocation7] sm:$0x1]  ;;  %v253_v25 = vsub.f32 %v772_v7, %v796_v19  ;;  %v265_v27 = vmul.f32 %v248_v17, %v248_v17  ;;  %v266_v28 = vmul.f32 %v249_v18, %v249_v18  ;;  %v808_v29 = vld [vmem:[#allocation7 + $0x4] sm:$0x1]  ;;  %s581_s1 = sshll.u32 %s730_s0, 4  ;;  %s582_s1 = int_to_ptr.vmem [resolvable:$true] %s581_s1 }
  0x18   :  { %v810_v30 = vld [vmem:[#allocation7 + $0x8] sm:$0x1]  ;;  %v812_v31 = vld [vmem:[#allocation7 + $0xc] sm:$0x1]  ;;  %v267_v32 = vmul.f32 %v250_v20, %v250_v20  ;;  %v268_v33 = vmul.f32 %v251_v21, %v251_v21  ;;  %v814_v35 = vld [vmem:[#allocation7 + $0x10] sm:$0x1]  ;;  %v822_v38 = vsub.f32 %v758_v0, %v804_v24  ;;  %v135_v55 = vsub.f32 %v760_v1, %v808_v29 }
  0x19   :  { %v269_v34 = vmul.f32 %v252_v22, %v252_v22  ;;  %v816_v36 = vld [vmem:[#allocation7 + $0x14] sm:$0x1]  ;;  %v818_v37 = vld [vmem:[#allocation7 + $0x18] sm:$0x1]  ;;  %v270_v39 = vmul.f32 %v253_v25, %v253_v25  ;;  %v279_v40 = vrot.slane %v264_v26, 7  ;;  %v281_v41 = vrot.slane %v265_v27, 6 }
  0x1a   :  { %v283_v42 = vrot.slane %v266_v28, 5  ;;  %v824_v43 = vld [vmem:[#allocation7 + $0x1c] sm:$0x1]  ;;  %v78_v44 = vld [vmem:[#allocation7 + $0x1] sm:$0x1]  ;;  %v285_v45 = vrot.slane %v267_v32, 4  ;;  %v136_v62 = vsub.f32 %v762_v2, %v810_v30 }
  0x1b   :  { %v287_v46 = vrot.slane %v268_v33, 3  ;;  %v289_v47 = vrot.slane %v269_v34, 2  ;;  %v79_v48 = vld [vmem:[#allocation7 + $0x5] sm:$0x1]  ;;  %v86_v49 = vadd.f32 %v78_v44, %v804_v24  ;;  %v280_v50 = vsel %vm168_vm0, %v279_v40, %v263_v23  ;;  %v80_v52 = vld [vmem:[#allocation7 + $0x9] sm:$0x1] }
  0x1c   :  { %v291_v51 = vrot.slane %v270_v39, 1  ;;  %v81_v53 = vld [vmem:[#allocation7 + $0xd] sm:$0x1]  ;;  %v87_v54 = vadd.f32 %v79_v48, %v808_v29  ;;  %v282_v56 = vsel %vm171_vm1, %v281_v41, %v280_v50  ;;  %v82_v57 = vld [vmem:[#allocation7 + $0x11] sm:$0x1]  ;;  %v88_v60 = vadd.f32 %v80_v52, %v810_v30  ;;  %s583_s28 = sshll.u32 %s1064_s2, 4  ;;  %s584_s28 = int_to_ptr.hbm [resolvable:$true] %s583_s28 }
  0x1d   :  { %v83_v58 = vld [vmem:[#allocation7 + $0x15] sm:$0x1]  ;;  %v84_v59 = vld [vmem:[#allocation7 + $0x19] sm:$0x1]  ;;  %v89_v61 = vadd.f32 %v81_v53, %v812_v31  ;;  %v284_v63 = vsel %vm174_vm2, %v283_v42, %v282_v56  ;;  %v85_v12 = vld [vmem:[#allocation7 + $0x1d] sm:$0x1]  ;;  %v90_v16 = vadd.f32 %v82_v57, %v814_v35 }
  0x1e   :  { %v91_v17 = vadd.f32 %v83_v58, %v816_v36  ;;  %v92_v18 = vadd.f32 %v84_v59, %v818_v37  ;;  %v94_v20 = vld [vmem:[#allocation7 + $0x2] sm:$0x1]  ;;  %v95_v21 = vld [vmem:[#allocation7 + $0x6] sm:$0x1]  ;;  %v286_v22 = vsel %vm177_vm3, %v285_v45, %v284_v63  ;;  %v93_v23 = vadd.f32 %v85_v12, %v824_v43  ;;  %v96_v25 = vld [vmem:[#allocation7 + $0xa] sm:$0x1] }
  0x1f   :  { %v97_v26 = vld [vmem:[#allocation7 + $0xe] sm:$0x1]  ;;  %v98_v27 = vld [vmem:[#allocation7 + $0x12] sm:$0x1]  ;;  %v102_v28 = vadd.f32 %v94_v20, %v86_v49  ;;  %v103_v32 = vadd.f32 %v95_v21, %v87_v54  ;;  %v288_v33 = vsel %vm180_vm4, %v287_v46, %v286_v22  ;;  %v99_v34 = vld [vmem:[#allocation7 + $0x16] sm:$0x1]  ;;  %v104_v41 = vadd.f32 %v96_v25, %v88_v60 }
  0x20   :  { %v100_v39 = vld [vmem:[#allocation7 + $0x1a] sm:$0x1]  ;;  %v101_v40 = vld [vmem:[#allocation7 + $0x1e] sm:$0x1]  ;;  %v105_v42 = vadd.f32 %v97_v26, %v89_v61  ;;  %v106_v44 = vadd.f32 %v98_v27, %v90_v16  ;;  %v290_v48 = vsel %vm183_vm5, %v289_v47, %v288_v33  ;;  %v107_v50 = vadd.f32 %v99_v34, %v91_v17  ;;  %v110_v53 = vld [vmem:[#allocation7 + $0x3] sm:$0x1] }
  0x21   :  { %v108_v52 = vadd.f32 %v100_v39, %v92_v18  ;;  %v109_v45 = vadd.f32 %v101_v40, %v93_v23  ;;  %v111_v56 = vld [vmem:[#allocation7 + $0x7] sm:$0x1]  ;;  %v112_v57 = vld [vmem:[#allocation7 + $0xb] sm:$0x1]  ;;  %v292_v58 = vsel %vm186_vm6, %v291_v51, %v290_v48  ;;  %v113_v49 = vld [vmem:[#allocation7 + $0xf] sm:$0x1]  ;;  %v845_v46 = vadd.f32 %v110_v53, %v102_v28 }
  0x22   :  { %v114_v54 = vld [vmem:[#allocation7 + $0x13] sm:$0x1]  ;;  %v115_v59 = vld [vmem:[#allocation7 + $0x17] sm:$0x1]  ;;  %v847_v63 = vadd.f32 %v111_v56, %v103_v32  ;;  %v849_v60 = vadd.f32 %v112_v57, %v104_v41  ;;  %294 = vadd.xlane.f32.xlu1 %v292_v58  ;;  %v116_v61 = vld [vmem:[#allocation7 + $0x1b] sm:$0x1]  ;;  %v851_v12 = vadd.f32 %v113_v49, %v105_v42  ;;  %v137_v51 = vsub.f32 %v764_v3, %v812_v31 }
  0x23   :  { %v117_v47 = vld [vmem:[#allocation7 + $0x1f] sm:$0x1]  ;;  %v853_v16 = vadd.f32 %v114_v54, %v106_v44  ;;  %v855_v17 = vadd.f32 %v115_v59, %v107_v50  ;;  %v859_v18 = vadd.f32 %v116_v61, %v108_v52  ;;  %v138_v21 = vsub.f32 %v766_v4, %v814_v35  ;;  %v867_v23 = vld [vmem:[#allocation7 + $0x2] sm:$0x1]  ;;  %v875_v32 = vld [vmem:[#allocation7 + $0x6] sm:$0x1] }
  0x24   :  { %v861_v20 = vadd.f32 %v117_v47, %v109_v45  ;;  %v139_v22 = vsub.f32 %v768_v5, %v816_v36  ;;  %v140_v25 = vsub.f32 %v770_v6, %v818_v37  ;;  %v141_v26 = vsub.f32 %v772_v7, %v824_v43  ;;  %v877_v41 = vld [vmem:[#allocation7 + $0xa] sm:$0x1]  ;;  %v879_v42 = vld [vmem:[#allocation7 + $0xe] sm:$0x1]  ;;  %v881_v44 = vld [vmem:[#allocation7 + $0x12] sm:$0x1] }
  0x25   :  { %v151_v27 = vmul.f32 %v822_v38, %v822_v38  ;;  %v152_v28 = vmul.f32 %v135_v55, %v135_v55  ;;  %v153_v33 = vmul.f32 %v136_v62, %v136_v62  ;;  %v154_v34 = vmul.f32 %v137_v51, %v137_v51  ;;  %v883_v45 = vld [vmem:[#allocation7 + $0x16] sm:$0x1]  ;;  %v885_v53 = vld [vmem:[#allocation7 + $0x1a] sm:$0x1]  ;;  %v889_v58 = vld [vmem:[#allocation7 + $0x1e] sm:$0x1] }
  0x26   :  { %v155_v39 = vmul.f32 %v138_v21, %v138_v21  ;;  %v156_v40 = vmul.f32 %v139_v22, %v139_v22  ;;  %v157_v48 = vmul.f32 %v140_v25, %v140_v25  ;;  %v158_v50 = vmul.f32 %v141_v26, %v141_v26  ;;  %s731_s29 = smov [#allocation10]   ;;  %s594_s5 = sshll.u32 %s1065_s3, 4  ;;  %s595_s5 = int_to_ptr.hbm [resolvable:$true] %s594_s5 }
  0x27   :  { %v167_v52 = vrot.slane %v152_v28, 7  ;;  %v348_v38 = vsub.f32 %v758_v0, %v867_v23  ;;  %v170_v55 = vrot.slane %v153_v33, 6  ;;  %v173_v62 = vrot.slane %v154_v34, 5  ;;  %s592_s2 = sshll.u32 %s731_s29, 4  ;;  %s593_s2 = int_to_ptr.vmem [resolvable:$true] %s592_s2 }
  0x28   :  { %v176_v56 = vrot.slane %v155_v39, 4  ;;  %v179_v57 = vrot.slane %v156_v40, 3  ;;  %v182_v54 = vrot.slane %v157_v48, 2  ;;  %v185_v59 = vrot.slane %v158_v50, 1  ;;  %v62_v48 = vld [vmem:[#allocation4 + $0x1] sm:$0x1] }
  0x29   :  { %v169_v49 = vsel %vm168_vm0, %v167_v52, %v151_v27  ;;  %v349_v61 = vsub.f32 %v760_v1, %v875_v32  ;;  %v350_v51 = vsub.f32 %v762_v2, %v877_v41  ;;  %v351_v21 = vsub.f32 %v764_v3, %v879_v42  ;;  %v67_v1 = vld [vmem:[#allocation4 + $0xb] sm:$0x1] }
  0x2a   :  { %v172_v47 = vsel %vm171_vm1, %v170_v55, %v169_v49  ;;  %v352_v22 = vsub.f32 %v766_v4, %v881_v44  ;;  %v353_v26 = vsub.f32 %v768_v5, %v883_v45  ;;  %v354_v27 = vsub.f32 %v770_v6, %v885_v53  ;;  %v63_v49 = vld [vmem:[#allocation4 + $0x3] sm:$0x1]  ;;  %v65_v5 = vld [vmem:[#allocation4 + $0x7] sm:$0x1] }
  0x2b   :  { %v175_v25 = vsel %vm174_vm2, %v173_v62, %v172_v47  ;;  %v355_v28 = vsub.f32 %v772_v7, %v889_v58  ;;  %v365_v34 = vmul.f32 %v348_v38, %v348_v38  ;;  %v366_v39 = vmul.f32 %v349_v61, %v349_v61  ;;  %v64_v47 = vld [vmem:[#allocation4 + $0x5] sm:$0x1]  ;;  %v66_v7 = vld [vmem:[#allocation4 + $0x9] sm:$0x1] }
  0x2c   :  { %v178_v33 = vsel %vm177_vm3, %v176_v56, %v175_v25  ;;  %v367_v40 = vmul.f32 %v350_v51, %v350_v51  ;;  %v368_v52 = vmul.f32 %v351_v21, %v351_v21  ;;  %v369_v55 = vmul.f32 %v352_v22, %v352_v22  ;;  %v68_v25 = vld [vmem:[#allocation4 + $0xd] sm:$0x1] }
  0x2d   :  { %v181_v50 = vsel %vm180_vm4, %v179_v57, %v178_v33  ;;  %v370_v62 = vmul.f32 %v353_v26, %v353_v26  ;;  %v371_v6 = vmul.f32 %v354_v27, %v354_v27  ;;  %v372_v3 = vmul.f32 %v355_v28, %v355_v28  ;;  %v69_v33 = vld [vmem:[#allocation4 + $0xf] sm:$0x1] }
  0x2e   :  { %v184_v4 = vsel %vm183_vm5, %v182_v54, %v181_v50  ;;  %v381_v2 = vrot.slane %v366_v39, 7  ;;  %v383_v56 = vrot.slane %v367_v40, 6  ;;  %v385_v61 = vrot.slane %v368_v52, 5 }
  0x2f   :  { %v187_v38 = vsel %vm186_vm6, %v185_v59, %v184_v4  ;;  %v387_v51 = vrot.slane %v369_v55, 4  ;;  %v389_v21 = vrot.slane %v370_v62, 3  ;;  %v391_v22 = vrot.slane %v371_v6, 2 }
  0x30   :  { %189 = vadd.xlane.f32.xlu0 %v187_v38  ;;  %v382_v57 = vsel %vm168_vm0, %v381_v2, %v365_v34  ;;  %v393_v26 = vrot.slane %v372_v3, 1  ;;  %v915_v27 = vsub.f32 %v62_v48, %v845_v46  ;;  %v918_v28 = vsub.f32 %v63_v49, %v847_v63 }
  0x31   :  { %v384_v54 = vsel %vm171_vm1, %v383_v56, %v382_v57  ;;  %v921_v4 = vsub.f32 %v64_v47, %v849_v60  ;;  %v925_v39 = vsub.f32 %v65_v5, %v851_v12  ;;  %v928_v2 = vsub.f32 %v66_v7, %v853_v16 }
  0x32   :  { %v386_v59 = vsel %vm174_vm2, %v385_v61, %v384_v54  ;;  %v931_v3 = vsub.f32 %v67_v1, %v855_v17  ;;  %v935_v46 = vsub.f32 %v68_v25, %v859_v18  ;;  %v938_v63 = vsub.f32 %v69_v33, %v861_v20 }
  0x33   :  { %v388_v6 = vsel %vm177_vm3, %v387_v51, %v386_v59  ;;  %v254_v60 = vadd.f32 %v774_v8, %v915_v27  ;;  %v255_v7 = vadd.f32 %v776_v9, %v918_v28  ;;  %v256_v1 = vadd.f32 %v778_v10, %v921_v4 }
  0x34   :  { %v390_v5 = vsel %vm180_vm4, %v389_v21, %v388_v6  ;;  %v257_v12 = vadd.f32 %v780_v11, %v925_v39  ;;  %v258_v17 = vadd.f32 %v784_v13, %v928_v2  ;;  %v259_v18 = vadd.f32 %v786_v14, %v931_v3 }
  0x35   :  { %v392_v16 = vsel %vm183_vm5, %v391_v22, %v390_v5  ;;  %v260_v8 = vadd.f32 %v788_v15, %v935_v46  ;;  %v261_v9 = vadd.f32 %v796_v19, %v938_v63  ;;  %v302_v10 = vmul.f32 %v254_v60, %v254_v60 }
  0x36   :  { %v394_v20 = vsel %vm186_vm6, %v393_v26, %v392_v16  ;;  %v303_v34 = vmul.f32 %v255_v7, %v255_v7  ;;  %v304_v11 = vmul.f32 %v256_v1, %v256_v1  ;;  %v305_v40 = vmul.f32 %v257_v12, %v257_v12 }
  0x37   :  { %396 = vadd.xlane.f32.xlu2 %v394_v20  ;;  %v306_v48 = vmul.f32 %v258_v17, %v258_v17  ;;  %v307_v50 = vmul.f32 %v259_v18, %v259_v18  ;;  %v308_v52 = vmul.f32 %v260_v8, %v260_v8  ;;  %v309_v13 = vmul.f32 %v261_v9, %v261_v9 }
  0x38   :  { %v318_v55 = vrot.slane %v303_v34, 7  ;;  %v142_v14 = vadd.f32 %v915_v27, %v804_v24  ;;  %v320_v62 = vrot.slane %v304_v11, 6  ;;  %v322_v15 = vrot.slane %v305_v40, 5 }
  0x39   :  { %v324_v49 = vrot.slane %v306_v48, 4  ;;  %v326_v47 = vrot.slane %v307_v50, 3  ;;  %v328_v19 = vrot.slane %v308_v52, 2  ;;  %v330_v56 = vrot.slane %v309_v13, 1 }
  0x3a   :  { %v319_v38 = vsel %vm168_vm0, %v318_v55, %v302_v10  ;;  %v143_v61 = vadd.f32 %v918_v28, %v808_v29  ;;  %v144_v25 = vadd.f32 %v921_v4, %v810_v30  ;;  %v145_v57 = vadd.f32 %v925_v39, %v812_v31 }
  0x3b   :  { %v321_v51 = vsel %vm171_vm1, %v320_v62, %v319_v38  ;;  %v146_v24 = vadd.f32 %v928_v2, %v814_v35  ;;  %v147_v22 = vadd.f32 %v931_v3, %v816_v36  ;;  %v148_v26 = vadd.f32 %v935_v46, %v818_v37 }
  0x3c   :  { %v323_v21 = vsel %vm174_vm2, %v322_v15, %v321_v51  ;;  %v149_v29 = vadd.f32 %v938_v63, %v824_v43  ;;  %v200_v30 = vmul.f32 %v142_v14, %v142_v14  ;;  %v201_v54 = vmul.f32 %v143_v61, %v143_v61  ;;  %v442_v15 = vld [vmem:[#allocation7 + $0x3] sm:$0x1]  ;;  %v446_v61 = vld [vmem:[#allocation7 + $0x13] sm:$0x1] }
  0x3d   :  { %v325_v33 = vsel %vm177_vm3, %v324_v49, %v323_v21  ;;  %v202_v59 = vmul.f32 %v144_v25, %v144_v25  ;;  %v203_v6 = vmul.f32 %v145_v57, %v145_v57  ;;  %v204_v35 = vmul.f32 %v146_v24, %v146_v24  ;;  %v443_v49 = vld [vmem:[#allocation7 + $0x7] sm:$0x1]  ;;  %v447_v57 = vld [vmem:[#allocation7 + $0x17] sm:$0x1]  ;;  %v448_v24 = vld [vmem:[#allocation7 + $0x1b] sm:$0x1] }
  0x3e   :  { %v327_v31 = vsel %vm180_vm4, %v326_v47, %v325_v33  ;;  %v205_v60 = vmul.f32 %v147_v22, %v147_v22  ;;  %v206_v7 = vmul.f32 %v148_v26, %v148_v26  ;;  %v207_v36 = vmul.f32 %v149_v29, %v149_v29  ;;  %v449_v33 = vld [vmem:[#allocation7 + $0x1f] sm:$0x1] }
  0x3f   :  { %v329_v5 = vsel %vm183_vm5, %v328_v19, %v327_v31  ;;  %v216_v1 = vrot.slane %v201_v54, 7  ;;  %v218_v12 = vrot.slane %v202_v59, 6  ;;  %v220_v16 = vrot.slane %v203_v6, 5  ;;  %v444_v19 = vld [vmem:[#allocation7 + $0xb] sm:$0x1] }
  0x40   :  { %v331_v37 = vsel %vm186_vm6, %v330_v56, %v329_v5  ;;  %v222_v43 = vrot.slane %v204_v35, 4  ;;  %v224_v18 = vrot.slane %v205_v60, 3  ;;  %v226_v8 = vrot.slane %v206_v7, 2  ;;  %v445_v56 = vld [vmem:[#allocation7 + $0xf] sm:$0x1] }
  0x41   :  { %333 = vadd.xlane.f32.xlu1 %v331_v37  ;;  %v217_v17 = vsel %vm168_vm0, %v216_v1, %v200_v30  ;;  %v228_v20 = vrot.slane %v207_v36, 1  ;;  %v356_v10 = vadd.f32 %v867_v23, %v915_v27  ;;  %v357_v34 = vadd.f32 %v875_v32, %v918_v28 }
  0x42   :  { %v219_v9 = vsel %vm171_vm1, %v218_v12, %v217_v17  ;;  %v358_v11 = vadd.f32 %v877_v41, %v921_v4  ;;  %v359_v48 = vadd.f32 %v879_v42, %v925_v39  ;;  %v360_v50 = vadd.f32 %v881_v44, %v928_v2 }
  0x43   :  { %v221_v40 = vsel %vm174_vm2, %v220_v16, %v219_v9  ;;  %v361_v52 = vadd.f32 %v883_v45, %v931_v3  ;;  %v362_v23 = vadd.f32 %v885_v53, %v935_v46  ;;  %v363_v32 = vadd.f32 %v889_v58, %v938_v63 }
  0x44   :  { %v223_v13 = vsel %vm177_vm3, %v222_v43, %v221_v40  ;;  %v404_v41 = vmul.f32 %v356_v10, %v356_v10  ;;  %v405_v14 = vmul.f32 %v357_v34, %v357_v34  ;;  %v406_v62 = vmul.f32 %v358_v11, %v358_v11 }
  0x45   :  { %v225_v55 = vsel %vm180_vm4, %v224_v18, %v223_v13  ;;  %v407_v42 = vmul.f32 %v359_v48, %v359_v48  ;;  %v408_v47 = vmul.f32 %v360_v50, %v360_v50  ;;  %v409_v45 = vmul.f32 %v361_v52, %v361_v52  ;;  %v1080_v52 = vld [vmem:[#allocation16_spill] sm:$0xff] }
  0x46   :  { %v227_v44 = vsel %vm183_vm5, %v226_v8, %v225_v55  ;;  %v410_v38 = vmul.f32 %v362_v23, %v362_v23  ;;  %v411_v51 = vmul.f32 %v363_v32, %v363_v32  ;;  %v420_v58 = vrot.slane %v405_v14, 7  ;;  %v1081_v23 = vld [vmem:[#allocation17_spill] sm:$0xff]  ;;  %v1082_v55 = vld [vmem:[#allocation18_spill] sm:$0xff] }
  0x47   :  { %v229_v53 = vsel %vm186_vm6, %v228_v20, %v227_v44  ;;  %v422_v25 = vrot.slane %v406_v62, 6  ;;  %v424_v21 = vrot.slane %v407_v42, 5  ;;  %v426_v22 = vrot.slane %v408_v47, 4  ;;  %v1083_v62 = vld [vmem:[#allocation19_spill] sm:$0xff]  ;;  %v1084_v44 = vld [vmem:[#allocation20_spill] sm:$0xff] }
  0x48   :  { %231 = vadd.xlane.f32.xlu0 %v229_v53  ;;  %v428_v26 = vrot.slane %v409_v45, 3  ;;  %v430_v29 = vrot.slane %v410_v38, 2  ;;  %v421_v30 = vsel %vm168_vm0, %v420_v58, %v404_v41  ;;  %v432_v54 = vrot.slane %v411_v51, 1  ;;  %v1085_v38 = vld [vmem:[#allocation21_spill] sm:$0xff]  ;;  %v1086_v51 = vld [vmem:[#allocation22_spill] sm:$0xff] }
  0x49   :  { %v458_v59 = vadd.f32 %v442_v15, %v915_v27  ;;  %v459_v31 = vadd.f32 %v443_v49, %v918_v28  ;;  %v423_v6 = vsel %vm171_vm1, %v422_v25, %v421_v30  ;;  %v460_v35 = vadd.f32 %v444_v19, %v921_v4 }
  0x4a   :  { %v461_v60 = vadd.f32 %v445_v56, %v925_v39  ;;  %v462_v5 = vadd.f32 %v446_v61, %v928_v2  ;;  %v425_v7 = vsel %vm174_vm2, %v424_v21, %v423_v6  ;;  %v463_v36 = vadd.f32 %v447_v57, %v931_v3 }
  0x4b   :  { %v464_v1 = vadd.f32 %v448_v24, %v935_v46  ;;  %v465_v37 = vadd.f32 %v449_v33, %v938_v63  ;;  %v427_v27 = vsel %vm177_vm3, %v426_v22, %v425_v7  ;;  %v506_v12 = vmul.f32 %v458_v59, %v458_v59 }
  0x4c   :  { %v507_v28 = vmul.f32 %v459_v31, %v459_v31  ;;  %v508_v16 = vmul.f32 %v460_v35, %v460_v35  ;;  %v429_v43 = vsel %vm180_vm4, %v428_v26, %v427_v27  ;;  %v509_v4 = vmul.f32 %v461_v60, %v461_v60 }
  0x4d   :  { %v510_v17 = vmul.f32 %v462_v5, %v462_v5  ;;  %v511_v39 = vmul.f32 %v463_v36, %v463_v36  ;;  %v431_v2 = vsel %vm183_vm5, %v430_v29, %v429_v43  ;;  %v512_v18 = vmul.f32 %v464_v1, %v464_v1 }
  0x4e   :  { %v513_v8 = vmul.f32 %v465_v37, %v465_v37  ;;  %v522_v20 = vrot.slane %v507_v28, 7  ;;  %v433_v3 = vsel %vm186_vm6, %v432_v54, %v431_v2  ;;  %v524_v46 = vrot.slane %v508_v16, 6 }
  0x4f   :  { %v526_v9 = vrot.slane %v509_v4, 5  ;;  %v528_v63 = vrot.slane %v510_v17, 4  ;;  %435 = vadd.xlane.f32.xlu2 %v433_v3  ;;  %v530_v34 = vrot.slane %v511_v39, 3  ;;  %v532_v11 = vrot.slane %v512_v18, 2 }
  0x50   :  { %v523_v10 = vsel %vm168_vm0, %v522_v20, %v506_v12  ;;  %v534_v40 = vrot.slane %v513_v8, 1  ;;  %v450_v50 = vsub.f32 %v758_v0, %v442_v15  ;;  %v451_v13 = vsub.f32 %v1080_v52, %v443_v49 }
  0x51   :  { %v525_v48 = vsel %vm171_vm1, %v524_v46, %v523_v10  ;;  %v452_v32 = vsub.f32 %v1081_v23, %v444_v19  ;;  %v453_v14 = vsub.f32 %v1082_v55, %v445_v56  ;;  %v454_v42 = vsub.f32 %v1083_v62, %v446_v61 }
  0x52   :  { %v527_v41 = vsel %vm174_vm2, %v526_v9, %v525_v48  ;;  %v455_v47 = vsub.f32 %v1084_v44, %v447_v57  ;;  %v456_v53 = vsub.f32 %v1085_v38, %v448_v24  ;;  %v457_v58 = vsub.f32 %v1086_v51, %v449_v33 }
  0x53   :  { %v529_v45 = vsel %vm177_vm3, %v528_v63, %v527_v41  ;;  %v467_v25 = vmul.f32 %v450_v50, %v450_v50  ;;  %v468_v15 = vmul.f32 %v451_v13, %v451_v13  ;;  %v469_v49 = vmul.f32 %v452_v32, %v452_v32 }
  0x54   :  { %v531_v0 = vsel %vm180_vm4, %v530_v34, %v529_v45  ;;  %v470_v19 = vmul.f32 %v453_v14, %v453_v14  ;;  %v471_v22 = vmul.f32 %v454_v42, %v454_v42  ;;  %v472_v56 = vmul.f32 %v455_v47, %v455_v47 }
  0x55   :  { %v533_v21 = vsel %vm183_vm5, %v532_v11, %v531_v0  ;;  %v473_v26 = vmul.f32 %v456_v53, %v456_v53  ;;  %v474_v57 = vmul.f32 %v457_v58, %v457_v58  ;;  %v483_v29 = vrot.slane %v468_v15, 7 }
  0x56   :  { %v535_v61 = vsel %vm186_vm6, %v534_v40, %v533_v21  ;;  %v485_v30 = vrot.slane %v469_v49, 6  ;;  %v487_v24 = vrot.slane %v470_v19, 5  ;;  %v489_v54 = vrot.slane %v471_v22, 4 }
  0x57   :  { %537 = vadd.xlane.f32.xlu1 %v535_v61  ;;  %v484_v33 = vsel %vm168_vm0, %v483_v29, %v467_v25  ;;  %v491_v59 = vrot.slane %v472_v56, 3  ;;  %vm51_vm7 = vcmask 60416   ;;  %v493_v6 = vrot.slane %v473_v26, 2 }
  0x58   :  { %v486_v31 = vsel %vm171_vm1, %v485_v30, %v484_v33  ;;  %v729_v35 = vmov 0.0   ;;  %v495_v5 = vrot.slane %v474_v57, 1  ;;  %v192_v27 = vlaneseq }
  0x59   :  { %52 = vst.msk [vmem:[#allocation2] sm:$0xf] %vm51_vm7, %v729_v35  ;;  %v488_v60 = vsel %vm174_vm2, %v487_v24, %v486_v31  ;;  %vm197_vm8 = vcmask 57344  }
  0x5a   :  { %53 = vst.msk [vmem:[#allocation3] sm:$0xf] %vm51_vm7, %v729_v35  ;;  %v490_v7 = vsel %vm177_vm3, %v489_v54, %v488_v60  ;;  %v193_v12 = vand.u32 127, %v192_v27  ;;  %v561_v56 = vshrl.u32 %v192_v27, 7 }
  0x5b   :  { %v492_v36 = vsel %vm180_vm4, %v491_v59, %v490_v7 }
  0x5c   :  { %v494_v1 = vsel %vm183_vm5, %v493_v6, %v492_v36 }
  0x5d   :  { %v496_v37 = vsel %vm186_vm6, %v495_v5, %v494_v1 }
  0x5e   :  { %498 = vadd.xlane.f32.xlu0 %v496_v37 }
  0x60   :  { %v262_v16 = vld [vmem:[#allocation2 + $0x1] sm:$0x1]  ;;  %v150_v39 = vld [vmem:[#allocation2] sm:$0x1]  ;;  %v364_v20 = vld [vmem:[#allocation2 + $0x2] sm:$0x1] }
  0x61   :  { %v301_v63 = vld [vmem:[#allocation3 + $0x1] sm:$0x1]  ;;  %v199_v40 = vld [vmem:[#allocation3] sm:$0x1]  ;;  %v403_v13 = vld [vmem:[#allocation3 + $0x2] sm:$0x1] }
  0x62   :  { %v505_v55 = vld [vmem:[#allocation3 + $0x3] sm:$0x1]  ;;  %v466_v44 = vld [vmem:[#allocation2 + $0x3] sm:$0x1] }
  0x95   :  { %v295_v28 = vpop.xlane.xlu1 %294 }
  0x96   :  { %v297_v43 = vperm.slane %v295_v28, %v193_v12 }
  0x98   :  { %v299_v4 = vadd.f32 %v297_v43, %v262_v16 }
  0x9a   :  { %300 = vst.msk [vmem:[#allocation2 + $0x1] sm:$0x1] %vm197_vm8, %v299_v4 }
  0xa3   :  { %v190_v17 = vpop.xlane.xlu0 %189 }
  0xa4   :  { %v194_v2 = vperm.slane %v190_v17, %v193_v12 }
  0xa6   :  { %v196_v18 = vadd.f32 %v194_v2, %v150_v39 }
  0xa8   :  { %198 = vst.msk [vmem:[#allocation2] sm:$0x1] %vm197_vm8, %v196_v18 }
  0xaa   :  { %v397_v8 = vpop.xlane.xlu2 %396 }
  0xab   :  { %v399_v3 = vperm.slane %v397_v8, %v193_v12 }
  0xad   :  { %v401_v46 = vadd.f32 %v399_v3, %v364_v20 }
  0xaf   :  { %402 = vst.msk [vmem:[#allocation2 + $0x2] sm:$0x1] %vm197_vm8, %v401_v46 }
  0xb4   :  { %v334_v9 = vpop.xlane.xlu1 %333 }
  0xb5   :  { %v336_v10 = vperm.slane %v334_v9, %v193_v12 }
  0xb7   :  { %v338_v34 = vadd.f32 %v336_v10, %v301_v63 }
  0xb9   :  { %339 = vst.msk [vmem:[#allocation3 + $0x1] sm:$0x1] %vm197_vm8, %v338_v34 }
  0xbb   :  { %v232_v11 = vpop.xlane.xlu0 %231 }
  0xbc   :  { %v234_v48 = vperm.slane %v232_v11, %v193_v12 }
  0xbe   :  { %v236_v50 = vadd.f32 %v234_v48, %v199_v40 }
  0xc0   :  { %237 = vst.msk [vmem:[#allocation3] sm:$0x1] %vm197_vm8, %v236_v50 }
  0xc2   :  { %v436_v52 = vpop.xlane.xlu2 %435 }
  0xc3   :  { %v438_v23 = vperm.slane %v436_v52, %v193_v12 }
  0xc5   :  { %v440_v32 = vadd.f32 %v438_v23, %v403_v13 }
  0xc7   :  { %441 = vst.msk [vmem:[#allocation3 + $0x2] sm:$0x1] %vm197_vm8, %v440_v32 }
  0xca   :  { %v538_v41 = vpop.xlane.xlu1 %537 }
  0xcb   :  { %v540_v14 = vperm.slane %v538_v41, %v193_v12 }
  0xcd   :  { %v542_v62 = vadd.f32 %v540_v14, %v505_v55 }
  0xcf   :  { %543 = vst.msk [vmem:[#allocation3 + $0x3] sm:$0x1] %vm197_vm8, %v542_v62 }
  0xd1   :  { %v499_v42 = vpop.xlane.xlu0 %498 }
  0xd2   :  { %v501_v47 = vperm.slane %v499_v42, %v193_v12 }
  0xd4   :  { %v503_v45 = vadd.f32 %v501_v47, %v466_v44 }
  0xd6   :  { %504 = vst.msk [vmem:[#allocation2 + $0x3] sm:$0x1] %vm197_vm8, %v503_v45  ;;  %v549_v38 = vld [vmem:[#allocation3] sm:$0xf] }
  0xd7   :  { %v550_v53 = vmul.f32 0.0026041667, %v549_v38 }
  0xdd   :  { %v547_v51 = vld [vmem:[#allocation2] sm:$0xf] }
  0xde   :  { %v548_v58 = vmul.f32 0.0078125, %v547_v51 }
  0xe0   :  { %v551_v25 = vadd.f32 %v550_v53, %v548_v58 }
  0xe2   :  { %v553_v0 = vsel %vm51_vm7, %v551_v25, inf }
  0xe3   :  { %v554_v15 = vrot.slane %v553_v0, 4 }
  0xe5   :  { %v555_v49 = vmin.f32 %v553_v0, %v554_v15 }
  0xe7   :  { %v556_v19 = vrot.slane %v555_v49, 2 }
  0xe9   :  { %v557_v21 = vmin.f32 %v555_v49, %v556_v19 }
  0xeb   :  { %v558_v22 = vrot.slane %v557_v21, 1 }
  0xed   :  { %v559_v26 = vmin.f32 %v557_v21, %v558_v22 }
  0xef   :  { %vm562_vm9 = vcmp.eq.f32.partialorder %v551_v25, %v559_v26  ;;  %574 = vst.msk [vmem:[#allocation9] sm:$0x1] %vm197_vm8, %v559_v26 }
  0xf0   :  { %v563_v61 = vsel %vm562_vm9, %v561_v56, 4  ;;  %586 = dma.vmem_to_hbm [thread:$0]  %s582_s1, 16, %s584_s28, [#allocation6]  }
  0xf1   :  { %v564_v57 = vsel %vm51_vm7, %v563_v61, 2147483647 }
  0xf2   :  { %v565_v29 = vrot.slane %v564_v57, 4 }
  0xf4   :  { %vm566_vm10 = vcmp.lt.s32.totalorder %v564_v57, %v565_v29 }
  0xf5   :  { %v567_v30 = vsel %vm566_vm10, %v564_v57, %v565_v29 }
  0xf6   :  { %v568_v24 = vrot.slane %v567_v30, 2 }
  0xf8   :  { %vm569_vm11 = vcmp.lt.s32.totalorder %v567_v30, %v568_v24 }
  0xf9   :  { %v570_v54 = vsel %vm569_vm11, %v567_v30, %v568_v24 }
  0xfa   :  { %v571_v33 = vrot.slane %v570_v54, 1 }
  0xfc   :  { %vm572_vm12 = vcmp.lt.s32.totalorder %v570_v54, %v571_v33 }
  0xfd   :  { %v573_v59 = vsel %vm572_vm12, %v570_v54, %v571_v33 }
  0xfe   :  { %575 = vst.msk [vmem:[#allocation10] sm:$0x1] %vm197_vm8, %v573_v59 }
  0xff   :  { %597 = dma.vmem_to_hbm [thread:$0]  %s593_s2, 16, %s595_s5, [#allocation11]  }
 0x100   :  { %719 = dma.done.wait [#allocation6], 16  }
 0x101   :  { %720 = vsyncadd [#allocation6], 4294967280 }
 0x102   :  { %721 = dma.done.wait [#allocation11], 16  }
 0x103   :  { %722 = vsyncadd [#allocation11], 4294967280 }
 0x104   :  { %606 = vsyncpa [#allocation5], 1 }
 0x105   :  { %607 = vsyncpa [#allocation8], 1 }
 0x106   :  { %608 = vsyncpa [#allocation6], 1 }
 0x107   :  { %609 = vsyncpa [#allocation11], 1 }

</bundles_post_ra>
